<compile_context>
chip_gen: v7x
topology: tpu7x:2x2x1
jax: 0.10.0
libtpu: 0.0.40
codegen_flags: <defaults>
</compile_context>

<pallas_src>
import numpy as np
import jax
import jax.numpy as jnp
from jax.experimental import pallas as pl
from jax.experimental.pallas import tpu as pltpu


def _round_up(x, m):
    return (x + m - 1) // m * m


def deeponet_branch_kernel(inp_ref,
                           bw1_ref, bb1_ref, bw2_ref, bb2_ref, bw3_ref, bb3_ref,
                           trunkT_ref, out_ref):
    """Branch MLP + fused combine with the pre-computed, pre-transposed trunk.

    inp_ref    : (TB, 2*N*N)          batch tile of flattened wavefunctions
    bw*/bb*    : branch weights (in, out) / biases (1, out), VMEM-resident
    trunkT_ref : (branch_dim, 2*N*N)  [real cols | imag cols], VMEM-resident
    out_ref    : (TB, 2*N*N)          lane-dense output slab [real | imag]
    """
    f32 = jnp.float32
    x = inp_ref[...]
    h = jnp.maximum(
        jnp.dot(x, bw1_ref[...], preferred_element_type=f32) + bb1_ref[...], 0.0)
    h = jnp.maximum(
        jnp.dot(h, bw2_ref[...], preferred_element_type=f32) + bb2_ref[...], 0.0)
    branch = jnp.dot(h, bw3_ref[...], preferred_element_type=f32) + bb3_ref[...]
    # Single lane-dense matmul replaces two sliced dot_generals + strided stores.
    out_ref[...] = jnp.dot(branch, trunkT_ref[...], preferred_element_type=f32)


def deeponet_forward(inp, params, coords, *, batch_tile=None):
    """inp: (B, 2, N, N) float32.  Returns (B, 2, N, N) float32."""
    B, C, N, _ = inp.shape
    assert C == 2
    NN = N * N
    D = 2 * NN                      # flattened input width == output lane width
    bd = params["bw3"].shape[1]     # branch_dim

    # ---- trunk net: batch-independent -> hoisted out of the kernel (XLA) ----
    t = jax.nn.relu(coords @ params["tw1"] + params["tb1"])
    t = jax.nn.relu(t @ params["tw2"] + params["tb2"])
    trunk = t @ params["tw3"] + params["tb3"]                     # (N*N, 2*bd)
    # (bd, 2*N*N): real columns first, then imag columns.
    trunkT = jnp.concatenate([trunk[:, :bd].T, trunk[:, bd:].T], axis=1)

    # ---- batch tiling (fill MXU M when B is large; >=1 sublane tile always) ----
    if batch_tile is None:
        batch_tile = 128 if B >= 128 else _round_up(B, 8)
    TB = batch_tile
    B_pad = _round_up(B, TB)
    inp_flat = inp.reshape(B, D)
    if B_pad != B:
        inp_flat = jnp.pad(inp_flat, ((0, B_pad - B), (0, 0)))

    grid = (pl.cdiv(B_pad, TB),)

    def _resident(arr):
        # Same block every grid step -> stays VMEM-resident across iterations.
        return pl.BlockSpec(arr.shape, lambda i: (0, 0))

    in_specs = [
        pl.BlockSpec((TB, D), lambda i: (i, 0)),          # batch tile (pipelined)
        _resident(params["bw1"]), _resident(params["bb1"]),
        _resident(params["bw2"]), _resident(params["bb2"]),
        _resident(params["bw3"]), _resident(params["bb3"]),
        _resident(trunkT),
    ]
    out_specs = pl.BlockSpec((TB, D), lambda i: (i, 0))

    # VMEM budget: resident weights/trunk + double-buffered in/out tiles + acts.
    f32b = 4
    resident_bytes = sum(
        int(np.prod(params[k].shape)) for k in
        ("bw1", "bb1", "bw2", "bb2", "bw3", "bb3")) * f32b + trunkT.size * f32b
    tile_bytes = 2 * 2 * TB * D * f32b            # input + output, double-buffered
    act_bytes = TB * (params["bw1"].shape[1] + params["bw2"].shape[1] + bd) * f32b
    vmem_limit = int(1.5 * (resident_bytes + tile_bytes + act_bytes)) + (8 << 20)

    out = pl.pallas_call(
        deeponet_branch_kernel,
        out_shape=jax.ShapeDtypeStruct((B_pad, D), jnp.float32),
        grid=grid,
        in_specs=in_specs,
        out_specs=out_specs,
        compiler_params=pltpu.CompilerParams(
            dimension_semantics=("parallel",),
            vmem_limit_bytes=vmem_limit),
    )(inp_flat,
      params["bw1"], params["bb1"], params["bw2"], params["bb2"],
      params["bw3"], params["bb3"], trunkT)

    # Columns [0, NN) are real, [NN, 2NN) are imag -> (B, 2, N, N).
    return out[:B].reshape(B, 2, N, N)


def make_params(key, N, branch_dim, hidden_branch, hidden_trunk):
    """Deterministic synthetic parameters, stored as (in, out) + (1, out) bias."""
    ks = jax.random.split(key, 12)

    def lin(kw, kb, d_in, d_out):
        scale = 1.0 / np.sqrt(d_in)
        w = jax.random.uniform(kw, (d_in, d_out), jnp.float32, -scale, scale)
        b = jax.random.uniform(kb, (1, d_out), jnp.float32, -scale, scale)
        return w, b

    p = {}
    p["bw1"], p["bb1"] = lin(ks[0], ks[1], 2 * N * N, hidden_branch)
    p["bw2"], p["bb2"] = lin(ks[2], ks[3], hidden_branch, hidden_branch)
    p["bw3"], p["bb3"] = lin(ks[4], ks[5], hidden_branch, branch_dim)
    p["tw1"], p["tb1"] = lin(ks[6], ks[7], 2, hidden_trunk)
    p["tw2"], p["tb2"] = lin(ks[8], ks[9], hidden_trunk, hidden_trunk)
    p["tw3"], p["tb3"] = lin(ks[10], ks[11], hidden_trunk, 2 * branch_dim)
    return p


def make_coords(N):
    xs = np.linspace(-1, 1, N)
    ys = np.linspace(-1, 1, N)
    X, Y = np.meshgrid(xs, ys, indexing="ij")
    coords = np.stack([X, Y], axis=-1).reshape(-1, 2).astype(np.float32)
    return jnp.asarray(coords)


def reference_forward(inp, params, coords):
    """Pure-JAX reference reproducing the PyTorch forward."""
    B, _, N, _ = inp.shape
    x = inp.reshape(B, -1)
    h = jax.nn.relu(x @ params["bw1"] + params["bb1"])
    h = jax.nn.relu(h @ params["bw2"] + params["bb2"])
    branch = h @ params["bw3"] + params["bb3"]
    t = jax.nn.relu(coords @ params["tw1"] + params["tb1"])
    t = jax.nn.relu(t @ params["tw2"] + params["tb2"])
    trunk = t @ params["tw3"] + params["tb3"]
    bd = branch.shape[-1]
    trunk_r = trunk.reshape(N * N, 2, bd)
    real_out = branch @ trunk_r[:, 0, :].T
    imag_out = branch @ trunk_r[:, 1, :].T
    return jnp.stack([real_out, imag_out], axis=1).reshape(B, 2, N, N)


if __name__ == "__main__":
    N = 16
    branch_dim = 64
    hidden_branch = 128
    hidden_trunk = 128
    batch = 2

    key = jax.random.PRNGKey(0)
    k_inp, k_par = jax.random.split(key)
    inp = jax.random.normal(k_inp, (batch, 2, N, N), dtype=jnp.float32)
    params = make_params(k_par, N, branch_dim, hidden_branch, hidden_trunk)
    coords = make_coords(N)

    out = deeponet_forward(inp, params, coords)
    out = jax.block_until_ready(out)

    ref = jax.block_until_ready(reference_forward(inp, params, coords))
    assert out.shape == (batch, 2, N, N)
    np.testing.assert_allclose(np.asarray(out), np.asarray(ref),
                               rtol=1e-5, atol=1e-4)

    print("KERNEL_OK")
</pallas_src>

<mosaic_0001>
module attributes {stable_mosaic.version = 11 : i64} {
  func.func @deeponet_branch_kernel(%arg0: i32, %arg1: memref<8x512xf32, #tpu.memory_space<vmem>>, %arg2: memref<512x128xf32, #tpu.memory_space<vmem>>, %arg3: memref<1x128xf32, #tpu.memory_space<vmem>>, %arg4: memref<128x128xf32, #tpu.memory_space<vmem>>, %arg5: memref<1x128xf32, #tpu.memory_space<vmem>>, %arg6: memref<128x64xf32, #tpu.memory_space<vmem>>, %arg7: memref<1x64xf32, #tpu.memory_space<vmem>>, %arg8: memref<64x512xf32, #tpu.memory_space<vmem>>, %arg9: memref<8x512xf32, #tpu.memory_space<vmem>>) attributes {dimension_semantics = [#tpu.dimension_semantics<parallel>], iteration_bounds = array<i64: 1>, scalar_prefetch = 0 : i64, scratch_operands = 0 : i64, tpu.core_type = #tpu.core_type<tc>, window_params = [{transform_indices = @transform_0, window_bounds = array<i64: 8, 512>}, {pipeline_mode = #tpu.pipeline_mode<synchronous>, transform_indices = @transform_1, window_bounds = array<i64: 512, 128>}, {pipeline_mode = #tpu.pipeline_mode<synchronous>, transform_indices = @transform_2, window_bounds = array<i64: 1, 128>}, {pipeline_mode = #tpu.pipeline_mode<synchronous>, transform_indices = @transform_3, window_bounds = array<i64: 128, 128>}, {pipeline_mode = #tpu.pipeline_mode<synchronous>, transform_indices = @transform_4, window_bounds = array<i64: 1, 128>}, {pipeline_mode = #tpu.pipeline_mode<synchronous>, transform_indices = @transform_5, window_bounds = array<i64: 128, 64>}, {pipeline_mode = #tpu.pipeline_mode<synchronous>, transform_indices = @transform_6, window_bounds = array<i64: 1, 64>}, {pipeline_mode = #tpu.pipeline_mode<synchronous>, transform_indices = @transform_7, window_bounds = array<i64: 64, 512>}, {transform_indices = @transform_8, window_bounds = array<i64: 8, 512>}]} {
    %c0 = arith.constant 0 : index
    %c0_0 = arith.constant 0 : index
    %0 = vector.load %arg1[%c0, %c0_0] : memref<8x512xf32, #tpu.memory_space<vmem>>, vector<8x512xf32>
    %c0_1 = arith.constant 0 : index
    %c0_2 = arith.constant 0 : index
    %1 = vector.load %arg2[%c0_1, %c0_2] : memref<512x128xf32, #tpu.memory_space<vmem>>, vector<512x128xf32>
    %cst = arith.constant dense<0.000000e+00> : vector<8x128xf32>
    %2 = tpu.matmul %0, %1, %cst {dimension_numbers = #tpu.dot_dimension_numbers<[1], [0], [0], [1], [0, 0, 1, 1], [], []>} : vector<8x512xf32>, vector<512x128xf32>, vector<8x128xf32> -> vector<8x128xf32>
    %c0_3 = arith.constant 0 : index
    %c0_4 = arith.constant 0 : index
    %3 = vector.load %arg3[%c0_3, %c0_4] : memref<1x128xf32, #tpu.memory_space<vmem>>, vector<1x128xf32>
    %4 = vector.broadcast %3 : vector<1x128xf32> to vector<8x128xf32>
    %5 = arith.addf %2, %4 : vector<8x128xf32>
    %cst_5 = arith.constant 0.000000e+00 : f32
    %6 = vector.broadcast %cst_5 : f32 to vector<8x128xf32>
    %7 = arith.maximumf %5, %6 : vector<8x128xf32>
    %c0_6 = arith.constant 0 : index
    %c0_7 = arith.constant 0 : index
    %8 = vector.load %arg4[%c0_6, %c0_7] : memref<128x128xf32, #tpu.memory_space<vmem>>, vector<128x128xf32>
    %cst_8 = arith.constant dense<0.000000e+00> : vector<8x128xf32>
    %9 = tpu.matmul %7, %8, %cst_8 {dimension_numbers = #tpu.dot_dimension_numbers<[1], [0], [0], [1], [0, 0, 1, 1], [], []>} : vector<8x128xf32>, vector<128x128xf32>, vector<8x128xf32> -> vector<8x128xf32>
    %c0_9 = arith.constant 0 : index
    %c0_10 = arith.constant 0 : index
    %10 = vector.load %arg5[%c0_9, %c0_10] : memref<1x128xf32, #tpu.memory_space<vmem>>, vector<1x128xf32>
    %11 = vector.broadcast %10 : vector<1x128xf32> to vector<8x128xf32>
    %12 = arith.addf %9, %11 : vector<8x128xf32>
    %cst_11 = arith.constant 0.000000e+00 : f32
    %13 = vector.broadcast %cst_11 : f32 to vector<8x128xf32>
    %14 = arith.maximumf %12, %13 : vector<8x128xf32>
    %c0_12 = arith.constant 0 : index
    %c0_13 = arith.constant 0 : index
    %15 = vector.load %arg6[%c0_12, %c0_13] : memref<128x64xf32, #tpu.memory_space<vmem>>, vector<128x64xf32>
    %cst_14 = arith.constant dense<0.000000e+00> : vector<8x64xf32>
    %16 = tpu.matmul %14, %15, %cst_14 {dimension_numbers = #tpu.dot_dimension_numbers<[1], [0], [0], [1], [0, 0, 1, 1], [], []>} : vector<8x128xf32>, vector<128x64xf32>, vector<8x64xf32> -> vector<8x64xf32>
    %c0_15 = arith.constant 0 : index
    %c0_16 = arith.constant 0 : index
    %17 = vector.load %arg7[%c0_15, %c0_16] : memref<1x64xf32, #tpu.memory_space<vmem>>, vector<1x64xf32>
    %18 = vector.broadcast %17 : vector<1x64xf32> to vector<8x64xf32>
    %19 = arith.addf %16, %18 : vector<8x64xf32>
    %c0_17 = arith.constant 0 : index
    %c0_18 = arith.constant 0 : index
    %20 = vector.load %arg8[%c0_17, %c0_18] : memref<64x512xf32, #tpu.memory_space<vmem>>, vector<64x512xf32>
    %cst_19 = arith.constant dense<0.000000e+00> : vector<8x512xf32>
    %21 = tpu.matmul %19, %20, %cst_19 {dimension_numbers = #tpu.dot_dimension_numbers<[1], [0], [0], [1], [0, 0, 1, 1], [], []>} : vector<8x64xf32>, vector<64x512xf32>, vector<8x512xf32> -> vector<8x512xf32>
    %c0_20 = arith.constant 0 : index
    %c0_21 = arith.constant 0 : index
    %22 = vector.load %arg9[%c0_20, %c0_21] : memref<8x512xf32, #tpu.memory_space<vmem>>, vector<8x512xf32>
    tpu.vector_store %arg9[%c0_20, %c0_21], %21 {strides = array<i32>} : memref<8x512xf32, #tpu.memory_space<vmem>>, vector<8x512xf32>,
    return
  }
  func.func @transform_0(%arg0: i32) -> (i32, i32) {
    %c0_i32 = arith.constant 0 : i32
    %c0_i32_0 = arith.constant 0 : i32
    return %arg0, %c0_i32 : i32, i32
  }
  func.func @transform_1(%arg0: i32) -> (i32, i32) {
    %c0_i32 = arith.constant 0 : i32
    %c0_i32_0 = arith.constant 0 : i32
    %c0_i32_1 = arith.constant 0 : i32
    return %c0_i32, %c0_i32_0 : i32, i32
  }
  func.func @transform_2(%arg0: i32) -> (i32, i32) {
    %c0_i32 = arith.constant 0 : i32
    %c0_i32_0 = arith.constant 0 : i32
    %c0_i32_1 = arith.constant 0 : i32
    return %c0_i32, %c0_i32_0 : i32, i32
  }
  func.func @transform_3(%arg0: i32) -> (i32, i32) {
    %c0_i32 = arith.constant 0 : i32
    %c0_i32_0 = arith.constant 0 : i32
    %c0_i32_1 = arith.constant 0 : i32
    return %c0_i32, %c0_i32_0 : i32, i32
  }
  func.func @transform_4(%arg0: i32) -> (i32, i32) {
    %c0_i32 = arith.constant 0 : i32
    %c0_i32_0 = arith.constant 0 : i32
    %c0_i32_1 = arith.constant 0 : i32
    return %c0_i32, %c0_i32_0 : i32, i32
  }
  func.func @transform_5(%arg0: i32) -> (i32, i32) {
    %c0_i32 = arith.constant 0 : i32
    %c0_i32_0 = arith.constant 0 : i32
    %c0_i32_1 = arith.constant 0 : i32
    return %c0_i32, %c0_i32_0 : i32, i32
  }
  func.func @transform_6(%arg0: i32) -> (i32, i32) {
    %c0_i32 = arith.constant 0 : i32
    %c0_i32_0 = arith.constant 0 : i32
    %c0_i32_1 = arith.constant 0 : i32
    return %c0_i32, %c0_i32_0 : i32, i32
  }
  func.func @transform_7(%arg0: i32) -> (i32, i32) {
    %c0_i32 = arith.constant 0 : i32
    %c0_i32_0 = arith.constant 0 : i32
    %c0_i32_1 = arith.constant 0 : i32
    return %c0_i32, %c0_i32_0 : i32, i32
  }
  func.func @transform_8(%arg0: i32) -> (i32, i32) {
    %c0_i32 = arith.constant 0 : i32
    %c0_i32_0 = arith.constant 0 : i32
    return %arg0, %c0_i32 : i32, i32
  }
}

</mosaic_0001>

<bundles_post_ra>
// kernel: tpu_custom_call.1
= control target key start
LH: loop header
LB: loop body
LE: loop exit
PB: predicated region body
PF: predicated region fallthrough
CT: control target
= control target key end

     0   :  { %13 = vsyncpa [#allocation3], 0  ;;  %s1292_s0 = inlined_call_operand.vmem [shape: f32[8,512], index: 0, kind: input, shape index: {}]   ;;  %s1293_s1 = inlined_call_operand.hbm [shape: f32[512,128], index: 1, kind: input, shape index: {}]   ;;  %s1294_s2 = inlined_call_operand.vmem [shape: f32[1,128], index: 2, kind: input, shape index: {}]   ;;  %s1295_s3 = inlined_call_operand.vmem [shape: f32[128,128], index: 3, kind: input, shape index: {}]   ;;  %s1296_s4 = inlined_call_operand.vmem [shape: f32[1,128], index: 4, kind: input, shape index: {}]   ;;  %s1297_s5 = inlined_call_operand.vmem [shape: f32[128,64], index: 5, kind: input, shape index: {}]   ;;  %s1298_s6 = inlined_call_operand.vmem [shape: f32[1,64], index: 6, kind: input, shape index: {}]   ;;  %s1299_s7 = inlined_call_operand.hbm [shape: f32[64,512], index: 7, kind: input, shape index: {}]   ;;  %s1300_s8 = inlined_call_operand.hbm [shape: f32[8,512], index: 8, kind: output, shape index: {}]  }
   0x1   :  { %14 = vsyncpa [#allocation6], 0 }
   0x2   :  { %15 = vsyncpa [#allocation4], 0  ;;  %s1064_s27 = smov [#allocation2]   ;;  %s992_s9 = scalar_lea.hbm %s1293_s1, 8192 }
   0x3   :  { %s23_s28 = sshll.u32 %s1064_s27, 4  ;;  %p993_p0 = scmp.ne.s32.totalorder %s1293_s1, %s992_s9  ;;  %s24_s28 = int_to_ptr.vmem [resolvable:$true] %s23_s28 }
   0x4   :  { %p996_p1 = scmp.lt.u32.totalorder %s992_s9, %s1293_s1 }
   0x6   :  { %p998_p2 = pnand %p996_p1, %p993_p0 }
   0x8   :  { %1001 = shalt.err (!%p998_p2)
}
   0x9   :  { %s1002_s14 = scalar_lea.vmem %s24_s28, 8192  ;;  %p1007_p4 = scmp.lt.s32.totalorder %s24_s28, %s24_s28 }
   0xa   :  { %p1003_p3 = scmp.ne.s32.totalorder %s24_s28, %s1002_s14  ;;  %p1008_p5 = scmp.lt.s32.totalorder %s1002_s14, %s1002_s14 }
   0xc   :  { %p1009_p6 = por %p1008_p5, %p1007_p4 }
   0xe   :  { %p1010_p7 = pnand %p1009_p6, %p1003_p3 }
  0x10   :  { %1013 = shalt.err (!%p1010_p7)
}
  0x11   :  { %s1065_s15 = smov 128   ;;  %s1066_s16 = smov 8  }
  0x12   :  { %29 = dma.hbm_to_vmem [thread:$0]  %s1293_s1, 8192, %s24_s28, [#allocation3], %s1065_s15, %s1065_s15, %s1066_s16  }
  0x13   :  { %s1067_s19 = smov [#allocation5]   ;;  %s1014_s23 = scalar_lea.hbm %s1299_s7, 4096 }
  0x14   :  { %s45_s20 = sshll.u32 %s1067_s19, 4  ;;  %p1015_p8 = scmp.ne.s32.totalorder %s1299_s7, %s1014_s23  ;;  %s46_s20 = int_to_ptr.vmem [resolvable:$true] %s45_s20 }
  0x15   :  { %p1018_p9 = scmp.lt.u32.totalorder %s1014_s23, %s1299_s7 }
  0x17   :  { %p1020_p10 = pnand %p1018_p9, %p1015_p8 }
  0x19   :  { %1023 = shalt.err (!%p1020_p10)
}
  0x1a   :  { %s1024_s29 = scalar_lea.vmem %s46_s20, 4096  ;;  %p1029_p12 = scmp.lt.s32.totalorder %s46_s20, %s46_s20 }
  0x1b   :  { %p1025_p11 = scmp.ne.s32.totalorder %s46_s20, %s1024_s29  ;;  %p1030_p13 = scmp.lt.s32.totalorder %s1024_s29, %s1024_s29 }
  0x1d   :  { %p1031_p0 = por %p1030_p13, %p1029_p12 }
  0x1f   :  { %p1032_p1 = pnand %p1031_p0, %p1025_p11 }
  0x21   :  { %1035 = shalt.err (!%p1032_p1)
}
  0x22   :  { %s1068_s1 = smov 512   ;;  %s1069_s28 = smov 32  }
  0x23   :  { %51 = dma.hbm_to_vmem [thread:$0]  %s1299_s7, 4096, %s46_s20, [#allocation6], %s1068_s1, %s1068_s1, %s1069_s28  }
  0x24   :  { %1058 = dma.done.wait [#allocation3], 8192  }
  0x25   :  { %1059 = vsyncadd [#allocation3], 4294959104 }
  0x26   :  { %1060 = dma.done.wait [#allocation6], 4096  }
  0x27   :  { %1061 = vsyncadd [#allocation6], 4294963200  ;;  %v78_v0 = vld [vmem:[#allocation2 + $0x80] sm:$0xff]  ;;  %v79_v1 = vld [vmem:[#allocation2 + $0x88] sm:$0xff]  ;;  %vm1071_vm0 = vmmov 0   ;;  %vm493_vm1 = vcmask 523264  }
  0x28   :  { %v62_v2 = vld [vmem:[#allocation2] sm:$0xff]  ;;  %v838_v3 = vpack.c.bf16 %v79_v1, %v78_v0  ;;  %v63_v4 = vld [vmem:[#allocation2 + $0x8] sm:$0xff]  ;;  %v80_v11 = vld [vmem:[#allocation2 + $0x90] sm:$0xff]  ;;  %s1073_s30 = smov [#allocation7]  }
  0x29   :  { %v110_v5 = vld [vmem:[#allocation2 + $0x180] sm:$0xff]  ;;  %v111_v6 = vld [vmem:[#allocation2 + $0x188] sm:$0xff]  ;;  %v840_v7 = vpack.c.bf16 %v63_v4, %v62_v2  ;;  %v81_v13 = vld [vmem:[#allocation2 + $0x98] sm:$0xff]  ;;  %s649_s9 = sshll.u32 %s1073_s30, 4  ;;  %s650_s9 = int_to_ptr.vmem [resolvable:$true] %s649_s9 }
  0x2a   :  { %v870_v8 = vpack.c.bf16 %v111_v6, %v110_v5  ;;  %v94_v9 = vld [vmem:[#allocation2 + $0x100] sm:$0xff]  ;;  %v95_v10 = vld [vmem:[#allocation2 + $0x108] sm:$0xff]  ;;  %839 = vmatprep.subr.bf16.mxu0 %v838_v3  ;;  %v64_v14 = vld [vmem:[#allocation2 + $0x10] sm:$0xff]  ;;  %v842_v16 = vpack.c.bf16 %v81_v13, %v80_v11  ;;  %s1036_s7 = scalar_lea.vmem %s650_s9, 512  ;;  %p1041_p3 = scmp.lt.s32.totalorder %s650_s9, %s650_s9 }
  0x2b   :  { %v872_v12 = vpack.c.bf16 %v95_v10, %v94_v9  ;;  %v65_v15 = vld [vmem:[#allocation2 + $0x18] sm:$0xff]  ;;  %841 = vmatpush3.bf16.msra.mxu0 %v840_v7  ;;  %v112_v18 = vld [vmem:[#allocation2 + $0x190] sm:$0xff]  ;;  %v82_v23 = vld [vmem:[#allocation2 + $0xa0] sm:$0xff]  ;;  %p1037_p2 = scmp.ne.s32.totalorder %s650_s9, %s1036_s7  ;;  %p1042_p4 = scmp.lt.s32.totalorder %s1036_s7, %s1036_s7 }
  0x2c   :  { %871 = vmatprep.subr.bf16.mxu1 %v870_v8  ;;  %v844_v17 = vpack.c.bf16 %v65_v15, %v64_v14  ;;  %v113_v19 = vld [vmem:[#allocation2 + $0x198] sm:$0xff]  ;;  %v96_v20 = vld [vmem:[#allocation2 + $0x110] sm:$0xff]  ;;  %v83_v24 = vld [vmem:[#allocation2 + $0xa8] sm:$0xff]  ;;  %843 = vmatprep.subr.bf16.mxu0 %v842_v16 }
  0x2d   :  { %873 = vmatpush3.bf16.msra.mxu1 %v872_v12  ;;  %v874_v21 = vpack.c.bf16 %v113_v19, %v112_v18  ;;  %v97_v22 = vld [vmem:[#allocation2 + $0x118] sm:$0xff]  ;;  %v846_v26 = vpack.c.bf16 %v83_v24, %v82_v23  ;;  %v66_v27 = vld [vmem:[#allocation2 + $0x20] sm:$0xff]  ;;  %v67_v28 = vld [vmem:[#allocation2 + $0x28] sm:$0xff]  ;;  %p1043_p5 = por %p1042_p4, %p1041_p3 }
  0x2e   :  { %v876_v25 = vpack.c.bf16 %v97_v22, %v96_v20  ;;  %v114_v29 = vld [vmem:[#allocation2 + $0x1a0] sm:$0xff]  ;;  %v115_v30 = vld [vmem:[#allocation2 + $0x1a8] sm:$0xff]  ;;  %v848_v33 = vpack.c.bf16 %v67_v28, %v66_v27  ;;  %v84_v35 = vld [vmem:[#allocation2 + $0xb0] sm:$0xff] }
  0x2f   :  { %875 = vmatprep.subr.bf16.mxu1 %v874_v21  ;;  %v98_v31 = vld [vmem:[#allocation2 + $0x120] sm:$0xff]  ;;  %v99_v32 = vld [vmem:[#allocation2 + $0x128] sm:$0xff]  ;;  %845 = vmatpush3.bf16.msra.mxu0 %v844_v17  ;;  %v878_v34 = vpack.c.bf16 %v115_v30, %v114_v29  ;;  %v85_v36 = vld [vmem:[#allocation2 + $0xb8] sm:$0xff]  ;;  %p1044_p6 = pnand %p1043_p5, %p1037_p2 }
  0x30   :  { %v68_v37 = vld [vmem:[#allocation2 + $0x30] sm:$0xff]  ;;  %847 = vmatprep.subr.bf16.mxu0 %v846_v26  ;;  %v880_v38 = vpack.c.bf16 %v99_v32, %v98_v31  ;;  %v850_v39 = vpack.c.bf16 %v85_v36, %v84_v35  ;;  %v69_v40 = vld [vmem:[#allocation2 + $0x38] sm:$0xff]  ;;  %v86_v46 = vld [vmem:[#allocation2 + $0xc0] sm:$0xff] }
  0x31   :  { %877 = vmatpush3.bf16.msra.mxu1 %v876_v25  ;;  %v116_v41 = vld [vmem:[#allocation2 + $0x1b0] sm:$0xff]  ;;  %v117_v42 = vld [vmem:[#allocation2 + $0x1b8] sm:$0xff]  ;;  %v87_v47 = vld [vmem:[#allocation2 + $0xc8] sm:$0xff]  ;;  %v852_v48 = vpack.c.bf16 %v69_v40, %v68_v37 }
  0x32   :  { %879 = vmatprep.subr.bf16.mxu1 %v878_v34  ;;  %v882_v43 = vpack.c.bf16 %v117_v42, %v116_v41  ;;  %v100_v44 = vld [vmem:[#allocation2 + $0x130] sm:$0xff]  ;;  %v101_v45 = vld [vmem:[#allocation2 + $0x138] sm:$0xff]  ;;  %v118_v49 = vld [vmem:[#allocation2 + $0x1c0] sm:$0xff]  ;;  %v854_v52 = vpack.c.bf16 %v87_v47, %v86_v46 }
  0x33   :  { %849 = vmatpush3.bf16.msra.mxu0 %v848_v33  ;;  %v119_v50 = vld [vmem:[#allocation2 + $0x1c8] sm:$0xff]  ;;  %v884_v51 = vpack.c.bf16 %v101_v45, %v100_v44  ;;  %v70_v53 = vld [vmem:[#allocation2 + $0x40] sm:$0xff]  ;;  %v88_v58 = vld [vmem:[#allocation2 + $0xd0] sm:$0xff] }
  0x34   :  { %851 = vmatprep.subr.bf16.mxu0 %v850_v39  ;;  %v71_v54 = vld [vmem:[#allocation2 + $0x48] sm:$0xff]  ;;  %v102_v55 = vld [vmem:[#allocation2 + $0x140] sm:$0xff]  ;;  %v886_v56 = vpack.c.bf16 %v119_v50, %v118_v49  ;;  %v89_v59 = vld [vmem:[#allocation2 + $0xd8] sm:$0xff]  ;;  %v1070_v39 = vmov 0.0|0.0  }
  0x35   :  { %881 = vmatpush3.bf16.msra.mxu1 %v880_v38  ;;  %v103_v57 = vld [vmem:[#allocation2 + $0x148] sm:$0xff]  ;;  %v120_v60 = vld [vmem:[#allocation2 + $0x1d0] sm:$0xff]  ;;  %v121_v61 = vld [vmem:[#allocation2 + $0x1d8] sm:$0xff]  ;;  %v856_v62 = vpack.c.bf16 %v71_v54, %v70_v53  ;;  %v858_v0 = vpack.c.bf16 %v89_v59, %v88_v58 }
  0x36   :  { %883 = vmatprep.subr.bf16.mxu1 %v882_v43  ;;  %v888_v63 = vpack.c.bf16 %v103_v57, %v102_v55  ;;  %v72_v1 = vld [vmem:[#allocation2 + $0x50] sm:$0xff]  ;;  %v73_v2 = vld [vmem:[#allocation2 + $0x58] sm:$0xff]  ;;  %v890_v4 = vpack.c.bf16 %v121_v61, %v120_v60  ;;  %v90_v6 = vld [vmem:[#allocation2 + $0xe0] sm:$0xff]  ;;  %v1072_v61 = vmov 0.0  }
  0x37   :  { %853 = vmatpush3.bf16.msra.mxu0 %v852_v48  ;;  %v104_v3 = vld [vmem:[#allocation2 + $0x150] sm:$0xff]  ;;  %v105_v5 = vld [vmem:[#allocation2 + $0x158] sm:$0xff]  ;;  %v91_v7 = vld [vmem:[#allocation2 + $0xe8] sm:$0xff]  ;;  %v860_v10 = vpack.c.bf16 %v73_v2, %v72_v1 }
  0x38   :  { %855 = vmatprep.subr.bf16.mxu0 %v854_v52  ;;  %v122_v8 = vld [vmem:[#allocation2 + $0x1e0] sm:$0xff]  ;;  %v123_v9 = vld [vmem:[#allocation2 + $0x1e8] sm:$0xff]  ;;  %v892_v13 = vpack.c.bf16 %v105_v5, %v104_v3  ;;  %v862_v14 = vpack.c.bf16 %v91_v7, %v90_v6  ;;  %v92_v19 = vld [vmem:[#allocation2 + $0xf0] sm:$0xff] }
  0x39   :  { %885 = vmatpush3.bf16.msra.mxu1 %v884_v51  ;;  %v74_v11 = vld [vmem:[#allocation2 + $0x60] sm:$0xff]  ;;  %v75_v12 = vld [vmem:[#allocation2 + $0x68] sm:$0xff]  ;;  %v894_v18 = vpack.c.bf16 %v123_v9, %v122_v8  ;;  %v93_v20 = vld [vmem:[#allocation2 + $0xf8] sm:$0xff] }
  0x3a   :  { %887 = vmatprep.subr.bf16.mxu1 %v886_v56  ;;  %v106_v15 = vld [vmem:[#allocation2 + $0x160] sm:$0xff]  ;;  %v107_v16 = vld [vmem:[#allocation2 + $0x168] sm:$0xff]  ;;  %v61_v21 = vld [vmem:[%s1292_s0 + $0x18] sm:$0xff]  ;;  %v864_v24 = vpack.c.bf16 %v75_v12, %v74_v11  ;;  %v866_v26 = vpack.c.bf16 %v93_v20, %v92_v19 }
  0x3b   :  { %857 = vmatpush3.bf16.msra.mxu0 %v856_v62  ;;  %v59_v17 = vld [vmem:[%s1292_s0 + $0x8] sm:$0xff]  ;;  %v124_v22 = vld [vmem:[#allocation2 + $0x1f0] sm:$0xff]  ;;  %v125_v23 = vld [vmem:[#allocation2 + $0x1f8] sm:$0xff]  ;;  %267 = vmatprep.mubr.f32.mxu1 %v61_v21  ;;  %v896_v25 = vpack.c.bf16 %v107_v16, %v106_v15 }
  0x3c   :  { %859 = vmatprep.subr.bf16.mxu0 %v858_v0  ;;  %197 = vmatprep.mubr.f32.mxu0 %v59_v17  ;;  %v76_v27 = vld [vmem:[#allocation2 + $0x70] sm:$0xff]  ;;  %v77_v28 = vld [vmem:[#allocation2 + $0x78] sm:$0xff]  ;;  %v898_v29 = vpack.c.bf16 %v125_v23, %v124_v22  ;;  %v274_v34 = vld [vmem:[%s1295_s3] sm:$0xff] }
  0x3d   :  { %889 = vmatpush3.bf16.msra.mxu1 %v888_v63  ;;  %v108_v30 = vld [vmem:[#allocation2 + $0x170] sm:$0xff]  ;;  %v109_v31 = vld [vmem:[#allocation2 + $0x178] sm:$0xff]  ;;  %v868_v32 = vpack.c.bf16 %v77_v28, %v76_v27  ;;  %v275_v35 = vld [vmem:[%s1295_s3 + $0x8] sm:$0xff] }
  0x3e   :  { %891 = vmatprep.subr.bf16.mxu1 %v890_v4  ;;  %v900_v33 = vpack.c.bf16 %v109_v31, %v108_v30  ;;  %v58_v36 = vld [vmem:[%s1292_s0] sm:$0xff]  ;;  %v903_v37 = vpack.c.bf16 %v275_v35, %v274_v34  ;;  %v60_v38 = vld [vmem:[%s1292_s0 + $0x10] sm:$0xff]  ;;  %v277_v41 = vld [vmem:[%s1295_s3 + $0x18] sm:$0xff] }
  0x3f   :  { %861 = vmatpush3.bf16.msra.mxu0 %v860_v10  ;;  %v276_v40 = vld [vmem:[%s1295_s3 + $0x10] sm:$0xff]  ;;  %v278_v43 = vld [vmem:[%s1295_s3 + $0x20] sm:$0xff]  ;;  %v279_v44 = vld [vmem:[%s1295_s3 + $0x28] sm:$0xff] }
  0x40   :  { %863 = vmatprep.subr.bf16.mxu0 %v862_v14  ;;  %v906_v42 = vpack.c.bf16 %v277_v41, %v276_v40  ;;  %v909_v45 = vpack.c.bf16 %v279_v44, %v278_v43  ;;  %v280_v46 = vld [vmem:[%s1295_s3 + $0x30] sm:$0xff]  ;;  %v281_v47 = vld [vmem:[%s1295_s3 + $0x38] sm:$0xff]  ;;  %v282_v49 = vld [vmem:[%s1295_s3 + $0x40] sm:$0xff] }
  0x41   :  { %893 = vmatpush3.bf16.msra.mxu1 %v892_v13  ;;  %v912_v48 = vpack.c.bf16 %v281_v47, %v280_v46  ;;  %v283_v50 = vld [vmem:[%s1295_s3 + $0x48] sm:$0xff]  ;;  %v284_v52 = vld [vmem:[%s1295_s3 + $0x50] sm:$0xff]  ;;  %v285_v53 = vld [vmem:[%s1295_s3 + $0x58] sm:$0xff] }
  0x42   :  { %895 = vmatprep.subr.bf16.mxu1 %v894_v18  ;;  %v915_v51 = vpack.c.bf16 %v283_v50, %v282_v49  ;;  %v918_v54 = vpack.c.bf16 %v285_v53, %v284_v52  ;;  %v286_v55 = vld [vmem:[%s1295_s3 + $0x60] sm:$0xff]  ;;  %v287_v56 = vld [vmem:[%s1295_s3 + $0x68] sm:$0xff]  ;;  %v288_v58 = vld [vmem:[%s1295_s3 + $0x70] sm:$0xff] }
  0x43   :  { %865 = vmatpush3.bf16.msra.mxu0 %v864_v24  ;;  %v921_v57 = vpack.c.bf16 %v287_v56, %v286_v55  ;;  %v289_v59 = vld [vmem:[%s1295_s3 + $0x78] sm:$0xff]  ;;  %v368_v62 = vld [vmem:[%s1297_s5] sm:$0xff]  ;;  %v369_v63 = vld [vmem:[%s1297_s5 + $0x8] sm:$0xff] }
  0x44   :  { %867 = vmatprep.subr.bf16.mxu0 %v866_v26  ;;  %v924_v60 = vpack.c.bf16 %v289_v59, %v288_v58  ;;  %v370_v0 = vld [vmem:[%s1297_s5 + $0x10] sm:$0xff]  ;;  %v927_v1 = vpack.c.bf16 %v369_v63, %v368_v62  ;;  %v371_v2 = vld [vmem:[%s1297_s5 + $0x18] sm:$0xff]  ;;  %v372_v4 = vld [vmem:[%s1297_s5 + $0x20] sm:$0xff] }
  0x45   :  { %897 = vmatpush3.bf16.msra.mxu1 %v896_v25  ;;  %v930_v3 = vpack.c.bf16 %v371_v2, %v370_v0  ;;  %v373_v5 = vld [vmem:[%s1297_s5 + $0x28] sm:$0xff]  ;;  %v374_v7 = vld [vmem:[%s1297_s5 + $0x30] sm:$0xff]  ;;  %v375_v8 = vld [vmem:[%s1297_s5 + $0x38] sm:$0xff] }
  0x46   :  { %899 = vmatprep.subr.bf16.mxu1 %v898_v29  ;;  %v933_v6 = vpack.c.bf16 %v373_v5, %v372_v4  ;;  %v936_v9 = vpack.c.bf16 %v375_v8, %v374_v7  ;;  %v376_v10 = vld [vmem:[%s1297_s5 + $0x40] sm:$0xff]  ;;  %v377_v11 = vld [vmem:[%s1297_s5 + $0x48] sm:$0xff]  ;;  %v378_v13 = vld [vmem:[%s1297_s5 + $0x50] sm:$0xff] }
  0x47   :  { %869 = vmatpush3.bf16.msra.mxu0 %v868_v32  ;;  %v939_v12 = vpack.c.bf16 %v377_v11, %v376_v10  ;;  %v379_v14 = vld [vmem:[%s1297_s5 + $0x58] sm:$0xff]  ;;  %v380_v16 = vld [vmem:[%s1297_s5 + $0x60] sm:$0xff]  ;;  %v381_v17 = vld [vmem:[%s1297_s5 + $0x68] sm:$0xff] }
  0x48   :  { %902 = vmatprep.subr.bf16.mxu0 %v1070_v39  ;;  %v942_v15 = vpack.c.bf16 %v379_v14, %v378_v13  ;;  %v945_v18 = vpack.c.bf16 %v381_v17, %v380_v16  ;;  %v659_v20 = vld [vmem:[%s1294_s2] ss:$0 sm:$0xff]  ;;  %v382_v29 = vld [vmem:[%s1297_s5 + $0x70] sm:$0xff]  ;;  %v383_v30 = vld [vmem:[%s1297_s5 + $0x78] sm:$0xff] }
  0x49   :  { %901 = vmatpush3.bf16.msra.mxu1 %v900_v33  ;;  %v948_v31 = vpack.c.bf16 %v383_v30, %v382_v29  ;;  %v462_v32 = vld [vmem:[#allocation5 + $0x8] sm:$0xff]  ;;  %v464_v34 = vld [vmem:[#allocation5 + $0x18] sm:$0xff]  ;;  %v469_v44 = vld [vmem:[#allocation5 + $0x40] sm:$0xff] }
  0x4a   :  { %926 = vmatprep.subr.bf16.mxu1 %v1070_v39  ;;  %198 = vmatmul.mubr.f32.vlgmr.msra.gmra.mrb[0].mxu0 %v58_v36  ;;  %v466_v33 = vld [vmem:[#allocation5 + $0x28] sm:$0xff]  ;;  %v468_v36 = vld [vmem:[#allocation5 + $0x38] sm:$0xff]  ;;  %v477_v50 = vld [vmem:[#allocation5 + $0x80] sm:$0xff] }
  0x4b   :  { %904 = vmatpush3.bf16.msra.mxu0 %v903_v37  ;;  %800 = vmatprep.mubr.msk.f32.mxu0 %vm1071_vm0, %v1072_v61  ;;  %v950_v35 = vpack.c.bf16 %v466_v33, %v462_v32  ;;  %v461_v37 = vld [vmem:[#allocation5] sm:$0xff]  ;;  %v470_v41 = vld [vmem:[#allocation5 + $0x48] sm:$0xff]  ;;  %v467_v58 = vld [vmem:[#allocation5 + $0x30] sm:$0xff] }
  0x4c   :  { %268 = vmatmul.mubr.f32.vlgmr.msra.gmra.mrb[0].mxu1 %v60_v38  ;;  %905 = vmatprep.subr.bf16.mxu0 %v1070_v39  ;;  %v465_v38 = vld [vmem:[#allocation5 + $0x20] sm:$0xff]  ;;  %v478_v47 = vld [vmem:[#allocation5 + $0x88] sm:$0xff]  ;;  %v476_v62 = vld [vmem:[#allocation5 + $0x78] sm:$0xff] }
  0x4d   :  { %835 = vmatprep.mubr.msk.f32.mxu1 %vm1071_vm0, %v1072_v61  ;;  %928 = vmatpush3.bf16.msra.mxu1 %v927_v1  ;;  %v952_v40 = vpack.c.bf16 %v465_v38, %v461_v37  ;;  %v486_v53 = vld [vmem:[#allocation5 + $0xc8] sm:$0xff]  ;;  %v660_v56 = vld [vmem:[%s1296_s4] ss:$0 sm:$0xff]  ;;  %v471_v4 = vld [vmem:[#allocation5 + $0x50] sm:$0xff] }
  0x4e   :  { %929 = vmatprep.subr.bf16.mxu1 %v1070_v39  ;;  %v475_v5 = vld [vmem:[#allocation5 + $0x70] sm:$0xff]  ;;  %v484_v7 = vld [vmem:[#allocation5 + $0xb8] sm:$0xff]  ;;  %v485_v16 = vld [vmem:[#allocation5 + $0xc0] sm:$0xff] }
  0x4f   :  { %907 = vmatpush3.bf16.msra.mxu0 %v906_v42  ;;  %v474_v42 = vld [vmem:[#allocation5 + $0x68] sm:$0xff]  ;;  %v972_v8 = vpack.c.bf16 %v475_v5, %v471_v4  ;;  %v479_v10 = vld [vmem:[#allocation5 + $0x90] sm:$0xff]  ;;  %v492_v13 = vld [vmem:[#allocation5 + $0xf8] sm:$0xff] }
  0x50   :  { %908 = vmatprep.subr.bf16.mxu0 %v1070_v39  ;;  %v954_v43 = vpack.c.bf16 %v474_v42, %v470_v41  ;;  %v483_v11 = vld [vmem:[#allocation5 + $0xb0] sm:$0xff]  ;;  %v489_v17 = vld [vmem:[#allocation5 + $0xe0] sm:$0xff] }
  0x51   :  { %931 = vmatpush3.bf16.msra.mxu1 %v930_v3  ;;  %v976_v14 = vpack.c.bf16 %v483_v11, %v479_v10 }
  0x52   :  { %932 = vmatprep.subr.bf16.mxu1 %v1070_v39 }
  0x53   :  { %910 = vmatpush3.bf16.msra.mxu0 %v909_v45  ;;  %v473_v45 = vld [vmem:[#allocation5 + $0x60] sm:$0xff] }
  0x54   :  { %911 = vmatprep.subr.bf16.mxu0 %v1070_v39  ;;  %v956_v46 = vpack.c.bf16 %v473_v45, %v469_v44 }
  0x55   :  { %934 = vmatpush3.bf16.msra.mxu1 %v933_v6  ;;  %v480_v6 = vld [vmem:[#allocation5 + $0x98] sm:$0xff] }
  0x56   :  { %935 = vmatprep.subr.bf16.mxu1 %v1070_v39 }
  0x57   :  { %913 = vmatpush3.bf16.msra.mxu0 %v912_v48  ;;  %v482_v48 = vld [vmem:[#allocation5 + $0xa8] sm:$0xff] }
  0x58   :  { %914 = vmatprep.subr.bf16.mxu0 %v1070_v39  ;;  %v958_v49 = vpack.c.bf16 %v482_v48, %v478_v47 }
  0x59   :  { %937 = vmatpush3.bf16.msra.mxu1 %v936_v9  ;;  %v974_v9 = vpack.c.bf16 %v484_v7, %v480_v6 }
  0x5a   :  { %938 = vmatprep.subr.bf16.mxu1 %v1070_v39 }
  0x5b   :  { %916 = vmatpush3.bf16.msra.mxu0 %v915_v51  ;;  %v481_v51 = vld [vmem:[#allocation5 + $0xa0] sm:$0xff] }
  0x5c   :  { %917 = vmatprep.subr.bf16.mxu0 %v1070_v39  ;;  %v960_v52 = vpack.c.bf16 %v481_v51, %v477_v50 }
  0x5d   :  { %940 = vmatpush3.bf16.msra.mxu1 %v939_v12  ;;  %v488_v12 = vld [vmem:[#allocation5 + $0xd8] sm:$0xff] }
  0x5e   :  { %941 = vmatprep.subr.bf16.mxu1 %v1070_v39 }
  0x5f   :  { %919 = vmatpush3.bf16.msra.mxu0 %v918_v54  ;;  %v490_v54 = vld [vmem:[#allocation5 + $0xe8] sm:$0xff] }
  0x60   :  { %920 = vmatprep.subr.bf16.mxu0 %v1070_v39  ;;  %v962_v55 = vpack.c.bf16 %v490_v54, %v486_v53 }
  0x61   :  { %943 = vmatpush3.bf16.msra.mxu1 %v942_v15  ;;  %v978_v15 = vpack.c.bf16 %v492_v13, %v488_v12 }
  0x62   :  { %944 = vmatprep.subr.bf16.mxu1 %v1070_v39 }
  0x63   :  { %922 = vmatpush3.bf16.msra.mxu0 %v921_v57  ;;  %v463_v57 = vld [vmem:[#allocation5 + $0x10] sm:$0xff] }
  0x64   :  { %923 = vmatprep.subr.bf16.mxu0 %v1070_v39  ;;  %v968_v1 = vpack.c.bf16 %v467_v58, %v463_v57 }
  0x65   :  { %946 = vmatpush3.bf16.msra.mxu1 %v945_v18  ;;  %v487_v18 = vld [vmem:[#allocation5 + $0xd0] sm:$0xff] }
  0x66   :  { %947 = vmatprep.subr.bf16.mxu1 %v1070_v39  ;;  %v966_v39 = vpack.c.bf16 %v468_v36, %v464_v34 }
  0x67   :  { %925 = vmatpush3.bf16.msra.mxu0 %v924_v60  ;;  %v472_v60 = vld [vmem:[#allocation5 + $0x58] sm:$0xff] }
  0x68   :  { %951 = vmatprep.subr.bf16.mxu0 %v950_v35  ;;  %v970_v3 = vpack.c.bf16 %v476_v62, %v472_v60 }
  0x69   :  { %949 = vmatpush3.bf16.msra.mxu1 %v948_v31 }
  0x6a   :  { %967 = vmatprep.subr.bf16.mxu1 %v966_v39 }
 0x11d   :  { %v696_v19 = vpop.f32.mrb[0].mxu0 }
 0x11e   :  { %v697_v21 = vpop.f32.mrb[1].mxu0 }
 0x11f   :  { %v731_v22 = vpop.f32.mrb[0].mxu1  ;;  %v698_v23 = vadd.f32 %v697_v21, %v696_v19  ;;  %v964_v19 = vpack.c.bf16 %v489_v17, %v485_v16 }
 0x120   :  { %v732_v24 = vpop.f32.mrb[1].mxu1 }
 0x121   :  { %v733_v25 = vadd.f32 %v732_v24, %v731_v22  ;;  %v200_v26 = vadd.f32 %v698_v23, %v659_v20  ;;  %v491_v20 = vld [vmem:[#allocation5 + $0xf0] sm:$0xff] }
 0x122   :  { %v980_v21 = vpack.c.bf16 %v491_v20, %v487_v18 }
 0x123   :  { %v270_v27 = vadd.f32 %v733_v25, %v200_v26 }
 0x125   :  { %v273_v28 = vmax.f32 %v270_v27, 0.0 }
 0x127   :  { %801 = vmatmul.mubr.f32.vlgmr.msra.gmra.mrb[2].mxu0 %v273_v28 }
 0x128   :  { %561 = vmatprep.mubr.f32.mxu0 %v1072_v61  ;;  %953 = vmatpush1.bf16.msra.mxu0 %v952_v40 }
 0x129   :  { %955 = vmatprep.subr.bf16.mxu0 %v954_v43 }
 0x12c   :  { %957 = vmatpush1.bf16.msra.mxu0 %v956_v46 }
 0x12d   :  { %959 = vmatprep.subr.bf16.mxu0 %v958_v49 }
 0x130   :  { %961 = vmatpush1.bf16.msra.mxu0 %v960_v52 }
 0x131   :  { %963 = vmatprep.subr.bf16.mxu0 %v962_v55 }
 0x134   :  { %965 = vmatpush1.bf16.msra.mxu0 %v964_v19 }
 0x1fa   :  { %v363_v59 = vpop.f32.mrb[2].mxu0 }
 0x1fb   :  { %v364_v63 = vadd.f32 %v660_v56, %v363_v59  ;;  %v802_v0 = vpop.f32.mrb[3].mxu0 }
 0x1fd   :  { %v367_v2 = vmax.f32 %v364_v63, 0.0 }
 0x1ff   :  { %836 = vmatmul.mubr.f32.vlgmr.msra.gmra.mrb[2].mxu1 %v367_v2 }
 0x200   :  { %969 = vmatpush1.bf16.msra.mxu1 %v968_v1  ;;  %632 = vmatprep.mubr.f32.mxu1 %v1072_v61  ;;  %v661_v61 = vld [vmem:[%s1298_s6] ss:$0 sm:$0xff] }
 0x201   :  { %971 = vmatprep.subr.bf16.mxu1 %v970_v3 }
 0x204   :  { %973 = vmatpush1.bf16.msra.mxu1 %v972_v8 }
 0x205   :  { %975 = vmatprep.subr.bf16.mxu1 %v974_v9 }
 0x208   :  { %977 = vmatpush1.bf16.msra.mxu1 %v976_v14 }
 0x209   :  { %979 = vmatprep.subr.bf16.mxu1 %v978_v15 }
 0x20c   :  { %981 = vmatpush1.bf16.msra.mxu1 %v980_v21 }
 0x2d2   :  { %v457_v22 = vpop.f32.mrb[2].mxu1 }
 0x2d3   :  { %v458_v23 = vadd.f32 %v661_v61, %v457_v22  ;;  %v837_v24 = vpop.f32.mrb[3].mxu1 }
 0x2d5   :  { %662 = vmatmul.mubr.msk.f32.vlgmr.msra.gmra.mrb[4].mxu0 %vm493_vm1, %v458_v23  ;;  %663 = vmatmul.mubr.msk.f32.vlgmr.msra.gmra.mrb[4].mxu1 %vm493_vm1, %v458_v23 }
 0x3a8   :  { %v563_v25 = vpop.f32.mrb[4].mxu0  ;;  %v634_v26 = vpop.f32.mrb[4].mxu1 }
 0x3a9   :  { %639 = vst [vmem:[#allocation7] sm:$0xff] %v563_v25  ;;  %641 = vst [vmem:[#allocation7 + $0x10] sm:$0xff] %v634_v26  ;;  %v565_v27 = vpop.f32.mrb[5].mxu0  ;;  %v636_v28 = vpop.f32.mrb[5].mxu1 }
 0x3aa   :  { %640 = vst [vmem:[#allocation7 + $0x8] sm:$0xff] %v565_v27  ;;  %642 = vst [vmem:[#allocation7 + $0x18] sm:$0xff] %v636_v28 }
 0x3ab   :  { %1047 = shalt.err (!%p1044_p6)
}
 0x3ac   :  { %s1048_s11 = scalar_lea.hbm %s1300_s8, 512 }
 0x3ad   :  { %p1049_p7 = scmp.ne.s32.totalorder %s1300_s8, %s1048_s11  ;;  %p1052_p8 = scmp.lt.u32.totalorder %s1048_s11, %s1300_s8 }
 0x3af   :  { %p1054_p9 = pnand %p1052_p8, %p1049_p7 }
 0x3b1   :  { %1057 = shalt.err (!%p1054_p9)
}
 0x3b2   :  { %652 = dma.vmem_to_hbm [thread:$0]  %s650_s9, 512, %s1300_s8, [#allocation4]  }
 0x3b3   :  { %1062 = dma.done.wait [#allocation4], 512  }
 0x3b4   :  { %1063 = vsyncadd [#allocation4], 4294966784 }
 0x3b5   :  { %656 = vsyncpa [#allocation3], 1 }
 0x3b6   :  { %657 = vsyncpa [#allocation6], 1 }
 0x3b7   :  { %658 = vsyncpa [#allocation4], 1 }

</bundles_post_ra>
